<compile_context>
chip_gen: v7x
topology: tpu7x:2x2x1
jax: 0.10.0
libtpu: 0.0.40
codegen_flags: <defaults>
</compile_context>

<pallas_src>
import jax
import jax.numpy as jnp
from jax import lax
from jax.experimental import pallas as pl
from jax.experimental.pallas import tpu as pltpu


def _round_up(x, m):
    return ((x + m - 1) // m) * m


# ----------------------------- Pallas kernels ------------------------------

def _conv_bn_relu_kernel(a_ref, w_ref, scale_ref, bias_ref, o_ref):
    # a_ref:     (TILE_M, K_pad)   im2col patches (compute dtype, e.g. bf16)
    # w_ref:     (K_pad, C_pad)    reshaped conv weight (compute dtype)
    # scale_ref: (1, C_pad)        folded BN scale (f32)
    # bias_ref:  (1, C_pad)        folded BN bias  (f32)
    # o_ref:     (TILE_M, C_pad)   f32 output
    acc = jnp.dot(a_ref[...], w_ref[...], preferred_element_type=jnp.float32)
    y = acc * scale_ref[...] + bias_ref[...]
    o_ref[...] = jnp.maximum(y, 0.0).astype(o_ref.dtype)


def _maxpool_reduce_kernel(win_ref, o_ref):
    # win_ref: (9, TILE_M, C_pad)  pooling taps; reduce max over the tap axis.
    o_ref[...] = jnp.max(win_ref[...], axis=0)


# ------------------------------- wrappers -----------------------------------

def conv7x7_bn_relu(x_nchw, weight, scale, bias, *,
                    compute_dtype=jnp.bfloat16, tile_m_target=2048):
    """7x7 conv, stride 2, pad 3, no bias, folded BN, ReLU.

    Returns NHWC with the channel dimension padded to a multiple of 128
    (lane-dense); caller slices back to Cout at the end.
    """
    N, Cin, H, W = x_nchw.shape
    Cout = weight.shape[0]
    k, stride, pad = 7, 2, 3
    Hout = (H + 2 * pad - k) // stride + 1
    Wout = (W + 2 * pad - k) // stride + 1

    x = jnp.transpose(x_nchw, (0, 2, 3, 1))                  # NHWC
    xp = jnp.pad(x, ((0, 0), (pad, pad), (pad, pad), (0, 0)))

    # im2col (glue): tap order (i, j), channels fastest.
    patches = []
    for i in range(k):
        for j in range(k):
            patches.append(
                xp[:, i:i + stride * Hout:stride, j:j + stride * Wout:stride, :])
    A = jnp.concatenate(patches, axis=-1).reshape(N * Hout * Wout, k * k * Cin)

    # weight [Cout, Cin, kh, kw] -> [(kh, kw, Cin), Cout] to match patch order.
    W2 = jnp.transpose(weight, (2, 3, 1, 0)).reshape(k * k * Cin, Cout)

    M, K = A.shape
    K_pad = _round_up(K, 128)          # full MXU columns
    C_pad = _round_up(Cout, 128)       # lane-dense (unmasked) stores
    tile_m = min(tile_m_target, _round_up(M, 8))
    M_pad = _round_up(M, tile_m)

    A = jnp.pad(A, ((0, M_pad - M), (0, K_pad - K))).astype(compute_dtype)
    W2 = jnp.pad(W2, ((0, K_pad - K), (0, C_pad - Cout))).astype(compute_dtype)
    scale_p = jnp.pad(scale.astype(jnp.float32),
                      (0, C_pad - Cout)).reshape(1, C_pad)
    bias_p = jnp.pad(bias.astype(jnp.float32),
                     (0, C_pad - Cout)).reshape(1, C_pad)

    out = pl.pallas_call(
        _conv_bn_relu_kernel,
        out_shape=jax.ShapeDtypeStruct((M_pad, C_pad), jnp.float32),
        grid=(M_pad // tile_m,),
        in_specs=[
            pl.BlockSpec((tile_m, K_pad), lambda i: (i, 0)),   # pipelined over M
            pl.BlockSpec((K_pad, C_pad), lambda i: (0, 0)),    # resident weight
            pl.BlockSpec((1, C_pad), lambda i: (0, 0)),        # resident scale
            pl.BlockSpec((1, C_pad), lambda i: (0, 0)),        # resident bias
        ],
        out_specs=pl.BlockSpec((tile_m, C_pad), lambda i: (i, 0)),
        compiler_params=pltpu.CompilerParams(
            dimension_semantics=("parallel",),
            vmem_limit_bytes=32 * 1024 * 1024,
        ),
    )(A, W2, scale_p, bias_p)

    return out[:M].reshape(N, Hout, Wout, C_pad)


def maxpool3x3_s2_p1(y_nhwc, *, tile_m_target=2048):
    """MaxPool2d(kernel_size=3, stride=2, padding=1). NHWC in/out (C kept padded)."""
    N, H, W, C = y_nhwc.shape
    k, s, pad = 3, 2, 1
    Ho = (H + 2 * pad - k) // s + 1
    Wo = (W + 2 * pad - k) // s + 1

    # Input is post-ReLU (>= 0), so zero padding is equivalent to -inf padding.
    yp = jnp.pad(y_nhwc, ((0, 0), (pad, pad), (pad, pad), (0, 0)))
    wins = []
    for i in range(k):
        for j in range(k):
            wins.append(yp[:, i:i + s * Ho:s, j:j + s * Wo:s, :])
    windows = jnp.stack(wins, axis=0).reshape(k * k, N * Ho * Wo, C)

    M = N * Ho * Wo
    C_pad = _round_up(C, 128)
    tile_m = min(tile_m_target, _round_up(M, 8))
    M_pad = _round_up(M, tile_m)
    windows = jnp.pad(windows, ((0, 0), (0, M_pad - M), (0, C_pad - C)))

    out = pl.pallas_call(
        _maxpool_reduce_kernel,
        out_shape=jax.ShapeDtypeStruct((M_pad, C_pad), jnp.float32),
        grid=(M_pad // tile_m,),
        in_specs=[pl.BlockSpec((k * k, tile_m, C_pad), lambda i: (0, i, 0))],
        out_specs=pl.BlockSpec((tile_m, C_pad), lambda i: (i, 0)),
        compiler_params=pltpu.CompilerParams(
            dimension_semantics=("parallel",),
            vmem_limit_bytes=32 * 1024 * 1024,
        ),
    )(windows)
    return out[:M].reshape(N, Ho, Wo, C_pad)


def init_unit_large_forward(x_nchw, params, *, compute_dtype=jnp.bfloat16):
    """Equivalent of InitUnitLarge.forward. Input/output NCHW."""
    weight, gamma, beta, rmean, rvar = params
    eps = 1e-5
    Cout = weight.shape[0]
    scale = gamma / jnp.sqrt(rvar + eps)      # folded BatchNorm (eval mode)
    bias = beta - rmean * scale
    y = conv7x7_bn_relu(x_nchw, weight, scale, bias,
                        compute_dtype=compute_dtype)   # NHWC, C padded to 128
    p = maxpool3x3_s2_p1(y)                             # NHWC, C padded to 128
    p = p[..., :Cout]                                   # drop channel padding
    return jnp.transpose(p, (0, 3, 1, 2))               # back to NCHW


# ------------------------------ reference -----------------------------------

def _reference(x_nchw, params):
    weight, gamma, beta, rmean, rvar = params
    eps = 1e-5
    scale = gamma / jnp.sqrt(rvar + eps)
    bias = beta - rmean * scale
    y = lax.conv_general_dilated(
        x_nchw, weight, window_strides=(2, 2), padding=((3, 3), (3, 3)),
        dimension_numbers=('NCHW', 'OIHW', 'NCHW'))
    y = y * scale[None, :, None, None] + bias[None, :, None, None]
    y = jnp.maximum(y, 0.0)
    y = lax.reduce_window(y, -jnp.inf, lax.max,
                          window_dimensions=(1, 1, 3, 3),
                          window_strides=(1, 1, 2, 2),
                          padding=((0, 0), (0, 0), (1, 1), (1, 1)))
    return y


# --------------------------------- main --------------------------------------

if __name__ == "__main__":
    N, Cin, H, W = 2, 4, 16, 16
    Cout = 8

    key = jax.random.PRNGKey(0)
    kx, kw, kg, kb, km, kv = jax.random.split(key, 6)

    x = jax.random.normal(kx, (N, Cin, H, W), dtype=jnp.float32)
    weight = jax.random.normal(kw, (Cout, Cin, 7, 7), dtype=jnp.float32) * 0.1
    gamma = 1.0 + 0.1 * jax.random.normal(kg, (Cout,), dtype=jnp.float32)
    beta = 0.1 * jax.random.normal(kb, (Cout,), dtype=jnp.float32)
    rmean = 0.1 * jax.random.normal(km, (Cout,), dtype=jnp.float32)
    rvar = jnp.abs(jax.random.normal(kv, (Cout,), dtype=jnp.float32)) + 0.5

    params = (weight, gamma, beta, rmean, rvar)
    ref = jax.block_until_ready(_reference(x, params))

    # f32 compute path: tight correctness check of kernels + glue.
    out_f32 = jax.block_until_ready(
        init_unit_large_forward(x, params, compute_dtype=jnp.float32))
    assert out_f32.shape == (N, Cout, 4, 4), out_f32.shape
    assert jnp.allclose(out_f32, ref, atol=1e-4, rtol=1e-4), \
        float(jnp.max(jnp.abs(out_f32 - ref)))

    # bf16 compute path (default, perf-oriented): f32 MXU accumulation,
    # checked against the f32 reference with a bf16-appropriate tolerance.
    out_bf16 = jax.block_until_ready(
        init_unit_large_forward(x, params, compute_dtype=jnp.bfloat16))
    assert out_bf16.shape == (N, Cout, 4, 4), out_bf16.shape
    assert jnp.allclose(out_bf16, ref, atol=5e-2, rtol=5e-2), \
        float(jnp.max(jnp.abs(out_bf16 - ref)))

    print("KERNEL_OK")
</pallas_src>

<mosaic_0001>
module attributes {stable_mosaic.version = 11 : i64} {
  func.func @_conv_bn_relu_kernel(%arg0: i32, %arg1: memref<128x256xf32, #tpu.memory_space<vmem>>, %arg2: memref<256x128xf32, #tpu.memory_space<vmem>>, %arg3: memref<1x128xf32, #tpu.memory_space<vmem>>, %arg4: memref<1x128xf32, #tpu.memory_space<vmem>>, %arg5: memref<128x128xf32, #tpu.memory_space<vmem>>) attributes {dimension_semantics = [#tpu.dimension_semantics<parallel>], iteration_bounds = array<i64: 1>, scalar_prefetch = 0 : i64, scratch_operands = 0 : i64, tpu.core_type = #tpu.core_type<tc>, window_params = [{transform_indices = @transform_0, window_bounds = array<i64: 128, 256>}, {pipeline_mode = #tpu.pipeline_mode<synchronous>, transform_indices = @transform_1, window_bounds = array<i64: 256, 128>}, {pipeline_mode = #tpu.pipeline_mode<synchronous>, transform_indices = @transform_2, window_bounds = array<i64: 1, 128>}, {pipeline_mode = #tpu.pipeline_mode<synchronous>, transform_indices = @transform_3, window_bounds = array<i64: 1, 128>}, {transform_indices = @transform_4, window_bounds = array<i64: 128, 128>}]} {
    %c0 = arith.constant 0 : index
    %c0_0 = arith.constant 0 : index
    %0 = vector.load %arg1[%c0, %c0_0] : memref<128x256xf32, #tpu.memory_space<vmem>>, vector<128x256xf32>
    %c0_1 = arith.constant 0 : index
    %c0_2 = arith.constant 0 : index
    %1 = vector.load %arg2[%c0_1, %c0_2] : memref<256x128xf32, #tpu.memory_space<vmem>>, vector<256x128xf32>
    %cst = arith.constant dense<0.000000e+00> : vector<128x128xf32>
    %2 = tpu.matmul %0, %1, %cst {dimension_numbers = #tpu.dot_dimension_numbers<[1], [0], [0], [1], [0, 0, 1, 1], [], []>} : vector<128x256xf32>, vector<256x128xf32>, vector<128x128xf32> -> vector<128x128xf32>
    %c0_3 = arith.constant 0 : index
    %c0_4 = arith.constant 0 : index
    %3 = vector.load %arg3[%c0_3, %c0_4] : memref<1x128xf32, #tpu.memory_space<vmem>>, vector<1x128xf32>
    %4 = vector.broadcast %3 : vector<1x128xf32> to vector<128x128xf32>
    %5 = arith.mulf %2, %4 : vector<128x128xf32>
    %c0_5 = arith.constant 0 : index
    %c0_6 = arith.constant 0 : index
    %6 = vector.load %arg4[%c0_5, %c0_6] : memref<1x128xf32, #tpu.memory_space<vmem>>, vector<1x128xf32>
    %7 = vector.broadcast %6 : vector<1x128xf32> to vector<128x128xf32>
    %8 = arith.addf %5, %7 : vector<128x128xf32>
    %cst_7 = arith.constant 0.000000e+00 : f32
    %9 = vector.broadcast %cst_7 : f32 to vector<128x128xf32>
    %10 = arith.maximumf %8, %9 : vector<128x128xf32>
    %c0_8 = arith.constant 0 : index
    %c0_9 = arith.constant 0 : index
    %11 = vector.load %arg5[%c0_8, %c0_9] : memref<128x128xf32, #tpu.memory_space<vmem>>, vector<128x128xf32>
    tpu.vector_store %arg5[%c0_8, %c0_9], %10 {strides = array<i32>} : memref<128x128xf32, #tpu.memory_space<vmem>>, vector<128x128xf32>,
    return
  }
  func.func @transform_0(%arg0: i32) -> (i32, i32) {
    %c0_i32 = arith.constant 0 : i32
    %c0_i32_0 = arith.constant 0 : i32
    return %arg0, %c0_i32 : i32, i32
  }
  func.func @transform_1(%arg0: i32) -> (i32, i32) {
    %c0_i32 = arith.constant 0 : i32
    %c0_i32_0 = arith.constant 0 : i32
    %c0_i32_1 = arith.constant 0 : i32
    return %c0_i32, %c0_i32_0 : i32, i32
  }
  func.func @transform_2(%arg0: i32) -> (i32, i32) {
    %c0_i32 = arith.constant 0 : i32
    %c0_i32_0 = arith.constant 0 : i32
    %c0_i32_1 = arith.constant 0 : i32
    return %c0_i32, %c0_i32_0 : i32, i32
  }
  func.func @transform_3(%arg0: i32) -> (i32, i32) {
    %c0_i32 = arith.constant 0 : i32
    %c0_i32_0 = arith.constant 0 : i32
    %c0_i32_1 = arith.constant 0 : i32
    return %c0_i32, %c0_i32_0 : i32, i32
  }
  func.func @transform_4(%arg0: i32) -> (i32, i32) {
    %c0_i32 = arith.constant 0 : i32
    %c0_i32_0 = arith.constant 0 : i32
    return %arg0, %c0_i32 : i32, i32
  }
}

</mosaic_0001>

<bundles_post_ra>
// kernel: tpu_custom_call.1
= control target key start
LH: loop header
LB: loop body
LE: loop exit
PB: predicated region body
PF: predicated region fallthrough
CT: control target
= control target key end

     0   :  { %9 = vsyncpa [#allocation3], 0  ;;  %s676_s0 = inlined_call_operand.hbm [shape: f32[128,256], index: 0, kind: input, shape index: {}]   ;;  %s677_s1 = inlined_call_operand.hbm [shape: f32[256,128], index: 1, kind: input, shape index: {}]   ;;  %s678_s2 = inlined_call_operand.vmem [shape: f32[1,128], index: 2, kind: input, shape index: {}]   ;;  %s679_s3 = inlined_call_operand.vmem [shape: f32[1,128], index: 3, kind: input, shape index: {}]   ;;  %s680_s4 = inlined_call_operand.hbm [shape: f32[128,128], index: 4, kind: output, shape index: {}]  }
   0x1   :  { %10 = vsyncpa [#allocation6], 0 }
   0x2   :  { %11 = vsyncpa [#allocation4], 0  ;;  %s560_s15 = smov [#allocation2]   ;;  %s488_s19 = scalar_lea.hbm %s676_s0, 4096 }
   0x3   :  { %s17_s16 = sshll.u32 %s560_s15, 4  ;;  %p489_p0 = scmp.ne.s32.totalorder %s676_s0, %s488_s19  ;;  %s18_s16 = int_to_ptr.vmem [resolvable:$true] %s17_s16 }
   0x4   :  { %p492_p1 = scmp.lt.u32.totalorder %s488_s19, %s676_s0 }
   0x6   :  { %p494_p2 = pnand %p492_p1, %p489_p0 }
   0x8   :  { %497 = shalt.err (!%p494_p2)
}
   0x9   :  { %s498_s24 = scalar_lea.vmem %s18_s16, 4096  ;;  %p503_p4 = scmp.lt.s32.totalorder %s18_s16, %s18_s16 }
   0xa   :  { %p499_p3 = scmp.ne.s32.totalorder %s18_s16, %s498_s24  ;;  %p504_p5 = scmp.lt.s32.totalorder %s498_s24, %s498_s24 }
   0xc   :  { %p505_p6 = por %p504_p5, %p503_p4 }
   0xe   :  { %p506_p7 = pnand %p505_p6, %p499_p3 }
  0x10   :  { %509 = shalt.err (!%p506_p7)
}
  0x11   :  { %s561_s25 = smov 256   ;;  %s562_s26 = smov 16  }
  0x12   :  { %23 = dma.hbm_to_vmem [thread:$0]  %s676_s0, 4096, %s18_s16, [#allocation3], %s561_s25, %s561_s25, %s562_s26  }
  0x13   :  { %s563_s29 = smov [#allocation5]   ;;  %s510_s7 = scalar_lea.hbm %s677_s1, 4096 }
  0x14   :  { %s29_s30 = sshll.u32 %s563_s29, 4  ;;  %p511_p8 = scmp.ne.s32.totalorder %s677_s1, %s510_s7  ;;  %s30_s30 = int_to_ptr.vmem [resolvable:$true] %s29_s30 }
  0x15   :  { %p514_p9 = scmp.lt.u32.totalorder %s510_s7, %s677_s1 }
  0x17   :  { %p516_p10 = pnand %p514_p9, %p511_p8 }
  0x19   :  { %519 = shalt.err (!%p516_p10)
}
  0x1a   :  { %s520_s12 = scalar_lea.vmem %s30_s30, 4096  ;;  %p525_p12 = scmp.lt.s32.totalorder %s30_s30, %s30_s30 }
  0x1b   :  { %p521_p11 = scmp.ne.s32.totalorder %s30_s30, %s520_s12  ;;  %p526_p13 = scmp.lt.s32.totalorder %s520_s12, %s520_s12 }
  0x1d   :  { %p527_p0 = por %p526_p13, %p525_p12 }
  0x1f   :  { %p528_p1 = pnand %p527_p0, %p521_p11 }
  0x21   :  { %531 = shalt.err (!%p528_p1)
}
  0x22   :  { %s564_s0 = smov 128   ;;  %s565_s13 = smov 8  }
  0x23   :  { %35 = dma.hbm_to_vmem [thread:$0]  %s677_s1, 4096, %s30_s30, [#allocation6], %s564_s0, %s564_s0, %s565_s13  }
  0x24   :  { %554 = dma.done.wait [#allocation3], 4096  }
  0x25   :  { %555 = vsyncadd [#allocation3], 4294963200 }
  0x26   :  { %556 = dma.done.wait [#allocation6], 4096  }
  0x27   :  { %557 = vsyncadd [#allocation6], 4294963200  ;;  %v94_v0 = vld [vmem:[#allocation5 + $0x80] sm:$0xff]  ;;  %v95_v1 = vld [vmem:[#allocation5 + $0x88] sm:$0xff] }
  0x28   :  { %v78_v2 = vld [vmem:[#allocation5] sm:$0xff]  ;;  %v433_v3 = vpack.c.bf16 %v95_v1, %v94_v0  ;;  %v79_v4 = vld [vmem:[#allocation5 + $0x8] sm:$0xff]  ;;  %v96_v5 = vld [vmem:[#allocation5 + $0x90] sm:$0xff] }
  0x29   :  { %v97_v6 = vld [vmem:[#allocation5 + $0x98] sm:$0xff]  ;;  %v435_v7 = vpack.c.bf16 %v79_v4, %v78_v2  ;;  %v80_v9 = vld [vmem:[#allocation5 + $0x10] sm:$0xff]  ;;  %v98_v11 = vld [vmem:[#allocation5 + $0xa0] sm:$0xff] }
  0x2a   :  { %v437_v8 = vpack.c.bf16 %v97_v6, %v96_v5  ;;  %v81_v10 = vld [vmem:[#allocation5 + $0x18] sm:$0xff]  ;;  %434 = vmatprep.subr.bf16.mxu0 %v433_v3  ;;  %465 = vmatprep.subr.bf16.mxu1 %v433_v3  ;;  %v99_v12 = vld [vmem:[#allocation5 + $0xa8] sm:$0xff]  ;;  %v82_v15 = vld [vmem:[#allocation5 + $0x20] sm:$0xff] }
  0x2b   :  { %436 = vmatpush3.bf16.msra.mxu0 %v435_v7  ;;  %473 = vmatpush3.bf16.msra.mxu1 %v435_v7  ;;  %v439_v13 = vpack.c.bf16 %v81_v10, %v80_v9  ;;  %v441_v14 = vpack.c.bf16 %v99_v12, %v98_v11  ;;  %v83_v16 = vld [vmem:[#allocation5 + $0x28] sm:$0xff]  ;;  %v100_v17 = vld [vmem:[#allocation5 + $0xb0] sm:$0xff]  ;;  %v101_v18 = vld [vmem:[#allocation5 + $0xb8] sm:$0xff] }
  0x2c   :  { %438 = vmatprep.subr.bf16.mxu0 %v437_v8  ;;  %466 = vmatprep.subr.bf16.mxu1 %v437_v8  ;;  %v443_v19 = vpack.c.bf16 %v83_v16, %v82_v15  ;;  %v445_v20 = vpack.c.bf16 %v101_v18, %v100_v17  ;;  %v84_v21 = vld [vmem:[#allocation5 + $0x30] sm:$0xff]  ;;  %v85_v22 = vld [vmem:[#allocation5 + $0x38] sm:$0xff]  ;;  %v102_v23 = vld [vmem:[#allocation5 + $0xc0] sm:$0xff] }
  0x2d   :  { %v103_v24 = vld [vmem:[#allocation5 + $0xc8] sm:$0xff]  ;;  %v447_v27 = vpack.c.bf16 %v85_v22, %v84_v21  ;;  %v86_v29 = vld [vmem:[#allocation5 + $0x40] sm:$0xff]  ;;  %v104_v31 = vld [vmem:[#allocation5 + $0xd0] sm:$0xff] }
  0x2e   :  { %v47_v25 = vld [vmem:[#allocation2 + $0x8] sm:$0xff]  ;;  %v449_v28 = vpack.c.bf16 %v103_v24, %v102_v23  ;;  %v105_v32 = vld [vmem:[#allocation5 + $0xd8] sm:$0xff]  ;;  %v88_v35 = vld [vmem:[#allocation5 + $0x50] sm:$0xff] }
  0x2f   :  { %440 = vmatpush3.bf16.msra.mxu0 %v439_v13  ;;  %474 = vmatpush3.bf16.msra.mxu1 %v439_v13  ;;  %v63_v26 = vld [vmem:[#allocation2 + $0x88] sm:$0xff]  ;;  %v453_v34 = vpack.c.bf16 %v105_v32, %v104_v31  ;;  %v89_v36 = vld [vmem:[#allocation5 + $0x58] sm:$0xff]  ;;  %v106_v37 = vld [vmem:[#allocation5 + $0xe0] sm:$0xff] }
  0x30   :  { %442 = vmatprep.subr.bf16.mxu0 %v441_v14  ;;  %467 = vmatprep.subr.bf16.mxu1 %v441_v14  ;;  %v87_v30 = vld [vmem:[#allocation5 + $0x48] sm:$0xff]  ;;  %v455_v39 = vpack.c.bf16 %v89_v36, %v88_v35  ;;  %v90_v41 = vld [vmem:[#allocation5 + $0x60] sm:$0xff]  ;;  %v108_v43 = vld [vmem:[#allocation5 + $0xf0] sm:$0xff] }
  0x31   :  { %174 = vmatprep.mubr.f32.mxu0 %v47_v25  ;;  %214 = vmatprep.mubr.f32.mxu1 %v63_v26  ;;  %v451_v33 = vpack.c.bf16 %v87_v30, %v86_v29  ;;  %v107_v38 = vld [vmem:[#allocation5 + $0xe8] sm:$0xff]  ;;  %v109_v44 = vld [vmem:[#allocation5 + $0xf8] sm:$0xff]  ;;  %v92_v47 = vld [vmem:[#allocation5 + $0x70] sm:$0xff] }
  0x32   :  { %v457_v40 = vpack.c.bf16 %v107_v38, %v106_v37  ;;  %v91_v42 = vld [vmem:[#allocation5 + $0x68] sm:$0xff]  ;;  %v461_v46 = vpack.c.bf16 %v109_v44, %v108_v43  ;;  %v93_v48 = vld [vmem:[#allocation5 + $0x78] sm:$0xff]  ;;  %v46_v50 = vld [vmem:[#allocation2] sm:$0xff] }
  0x33   :  { %444 = vmatpush3.bf16.msra.mxu0 %v443_v19  ;;  %475 = vmatpush3.bf16.msra.mxu1 %v443_v19  ;;  %v459_v45 = vpack.c.bf16 %v91_v42, %v90_v41  ;;  %v463_v49 = vpack.c.bf16 %v93_v48, %v92_v47  ;;  %v62_v51 = vld [vmem:[#allocation2 + $0x80] sm:$0xff]  ;;  %v49_v52 = vld [vmem:[#allocation2 + $0x18] sm:$0xff]  ;;  %v48_v54 = vld [vmem:[#allocation2 + $0x10] sm:$0xff] }
  0x34   :  { %446 = vmatprep.subr.bf16.mxu0 %v445_v20  ;;  %468 = vmatprep.subr.bf16.mxu1 %v445_v20  ;;  %v65_v53 = vld [vmem:[#allocation2 + $0x98] sm:$0xff]  ;;  %v64_v55 = vld [vmem:[#allocation2 + $0x90] sm:$0xff]  ;;  %v51_v56 = vld [vmem:[#allocation2 + $0x28] sm:$0xff] }
  0x35   :  { %v67_v57 = vld [vmem:[#allocation2 + $0xa8] sm:$0xff]  ;;  %v50_v58 = vld [vmem:[#allocation2 + $0x20] sm:$0xff]  ;;  %v53_v60 = vld [vmem:[#allocation2 + $0x38] sm:$0xff] }
  0x36   :  { %v66_v59 = vld [vmem:[#allocation2 + $0xa0] sm:$0xff]  ;;  %v69_v61 = vld [vmem:[#allocation2 + $0xb8] sm:$0xff]  ;;  %v52_v62 = vld [vmem:[#allocation2 + $0x30] sm:$0xff] }
  0x37   :  { %448 = vmatpush3.bf16.msra.mxu0 %v447_v27  ;;  %476 = vmatpush3.bf16.msra.mxu1 %v447_v27  ;;  %v68_v63 = vld [vmem:[#allocation2 + $0xb0] sm:$0xff]  ;;  %v55_v0 = vld [vmem:[#allocation2 + $0x48] sm:$0xff]  ;;  %v54_v2 = vld [vmem:[#allocation2 + $0x40] sm:$0xff] }
  0x38   :  { %450 = vmatprep.subr.bf16.mxu0 %v449_v28  ;;  %469 = vmatprep.subr.bf16.mxu1 %v449_v28  ;;  %v71_v1 = vld [vmem:[#allocation2 + $0xc8] sm:$0xff]  ;;  %v70_v3 = vld [vmem:[#allocation2 + $0xc0] sm:$0xff]  ;;  %v57_v4 = vld [vmem:[#allocation2 + $0x58] sm:$0xff] }
  0x39   :  { %v73_v5 = vld [vmem:[#allocation2 + $0xd8] sm:$0xff]  ;;  %v56_v6 = vld [vmem:[#allocation2 + $0x50] sm:$0xff]  ;;  %v59_v8 = vld [vmem:[#allocation2 + $0x68] sm:$0xff] }
  0x3a   :  { %v72_v7 = vld [vmem:[#allocation2 + $0xd0] sm:$0xff]  ;;  %v75_v9 = vld [vmem:[#allocation2 + $0xe8] sm:$0xff]  ;;  %v58_v10 = vld [vmem:[#allocation2 + $0x60] sm:$0xff] }
  0x3b   :  { %452 = vmatpush3.bf16.msra.mxu0 %v451_v33  ;;  %477 = vmatpush3.bf16.msra.mxu1 %v451_v33  ;;  %v74_v11 = vld [vmem:[#allocation2 + $0xe0] sm:$0xff]  ;;  %v61_v12 = vld [vmem:[#allocation2 + $0x78] sm:$0xff]  ;;  %v60_v14 = vld [vmem:[#allocation2 + $0x70] sm:$0xff] }
  0x3c   :  { %454 = vmatprep.subr.bf16.mxu0 %v453_v34  ;;  %470 = vmatprep.subr.bf16.mxu1 %v453_v34  ;;  %v77_v13 = vld [vmem:[#allocation2 + $0xf8] sm:$0xff]  ;;  %v76_v15 = vld [vmem:[#allocation2 + $0xf0] sm:$0xff]  ;;  %v622_v19 = vld [vmem:[%s678_s2] ss:$0 sm:$0xff]  ;;  %s566_s2 = smov [#allocation7]  }
  0x3d   :  { %v627_v23 = vld [vmem:[%s679_s3] ss:$0 sm:$0xff]  ;;  %s338_s3 = sshll.u32 %s566_s2, 4  ;;  %s339_s3 = int_to_ptr.vmem [resolvable:$true] %s338_s3 }
  0x3e   :  { %s532_s19 = scalar_lea.vmem %s339_s3, 2048  ;;  %p537_p3 = scmp.lt.s32.totalorder %s339_s3, %s339_s3 }
  0x3f   :  { %456 = vmatpush3.bf16.msra.mxu0 %v455_v39  ;;  %478 = vmatpush3.bf16.msra.mxu1 %v455_v39  ;;  %p533_p2 = scmp.ne.s32.totalorder %s339_s3, %s532_s19  ;;  %p538_p4 = scmp.lt.s32.totalorder %s532_s19, %s532_s19 }
  0x40   :  { %458 = vmatprep.subr.bf16.mxu0 %v457_v40  ;;  %471 = vmatprep.subr.bf16.mxu1 %v457_v40 }
  0x41   :  { %p539_p5 = por %p538_p4, %p537_p3 }
  0x43   :  { %460 = vmatpush3.bf16.msra.mxu0 %v459_v45  ;;  %479 = vmatpush3.bf16.msra.mxu1 %v459_v45  ;;  %p540_p6 = pnand %p539_p5, %p533_p2 }
  0x44   :  { %462 = vmatprep.subr.bf16.mxu0 %v461_v46  ;;  %472 = vmatprep.subr.bf16.mxu1 %v461_v46 }
  0x47   :  { %464 = vmatpush3.bf16.msra.mxu0 %v463_v49  ;;  %480 = vmatpush3.bf16.msra.mxu1 %v463_v49 }
  0x4a   :  { %175 = vmatmul.mubr.f32.vlgmr.msra.gmra.mrb[0].mxu0 %v46_v50  ;;  %215 = vmatmul.mubr.f32.vlgmr.msra.gmra.mrb[0].mxu1 %v62_v51 }
  0x4b   :  { %179 = vmatprep.mubr.f32.mxu0 %v49_v52  ;;  %219 = vmatprep.mubr.f32.mxu1 %v65_v53 }
  0x4e   :  { %180 = vmatmul.mubr.f32.gmra.mrb[2].mxu0 %v48_v54  ;;  %220 = vmatmul.mubr.f32.gmra.mrb[2].mxu1 %v64_v55 }
  0x4f   :  { %184 = vmatprep.mubr.f32.mxu0 %v51_v56  ;;  %224 = vmatprep.mubr.f32.mxu1 %v67_v57 }
  0x52   :  { %185 = vmatmul.mubr.f32.gmra.mrb[4].mxu0 %v50_v58  ;;  %225 = vmatmul.mubr.f32.gmra.mrb[4].mxu1 %v66_v59 }
  0x53   :  { %189 = vmatprep.mubr.f32.mxu0 %v53_v60  ;;  %229 = vmatprep.mubr.f32.mxu1 %v69_v61 }
  0x56   :  { %190 = vmatmul.mubr.f32.gmra.mrb[6].mxu0 %v52_v62  ;;  %230 = vmatmul.mubr.f32.gmra.mrb[6].mxu1 %v68_v63 }
  0x57   :  { %194 = vmatprep.mubr.f32.mxu0 %v55_v0  ;;  %234 = vmatprep.mubr.f32.mxu1 %v71_v1 }
  0x5a   :  { %195 = vmatmul.mubr.f32.gmra.mrb[8].mxu0 %v54_v2  ;;  %235 = vmatmul.mubr.f32.gmra.mrb[8].mxu1 %v70_v3 }
  0x5b   :  { %199 = vmatprep.mubr.f32.mxu0 %v57_v4  ;;  %239 = vmatprep.mubr.f32.mxu1 %v73_v5 }
  0x5e   :  { %200 = vmatmul.mubr.f32.gmra.mrb[10].mxu0 %v56_v6  ;;  %240 = vmatmul.mubr.f32.gmra.mrb[10].mxu1 %v72_v7 }
  0x5f   :  { %204 = vmatprep.mubr.f32.mxu0 %v59_v8  ;;  %244 = vmatprep.mubr.f32.mxu1 %v75_v9 }
  0x62   :  { %205 = vmatmul.mubr.f32.gmra.mrb[12].mxu0 %v58_v10  ;;  %245 = vmatmul.mubr.f32.gmra.mrb[12].mxu1 %v74_v11 }
  0x63   :  { %209 = vmatprep.mubr.f32.mxu0 %v61_v12  ;;  %249 = vmatprep.mubr.f32.mxu1 %v77_v13 }
  0x66   :  { %210 = vmatmul.mubr.f32.gmra.mrb[14].mxu0 %v60_v14  ;;  %250 = vmatmul.mubr.f32.gmra.mrb[14].mxu1 %v76_v15 }
 0x11d   :  { %v385_v16 = vpop.f32.mrb[0].mxu0  ;;  %v409_v17 = vpop.f32.mrb[0].mxu1 }
 0x11e   :  { %v386_v18 = vpop.f32.mrb[1].mxu0  ;;  %v410_v20 = vpop.f32.mrb[1].mxu1 }
 0x11f   :  { %v387_v21 = vadd.f32 %v386_v18, %v385_v16  ;;  %v411_v22 = vadd.f32 %v410_v20, %v409_v17 }
 0x121   :  { %v262_v24 = vmul.f32 %v387_v21, %v622_v19  ;;  %v270_v25 = vmul.f32 %v411_v22, %v622_v19  ;;  %v388_v26 = vpop.f32.mrb[2].mxu0  ;;  %v412_v27 = vpop.f32.mrb[2].mxu1 }
 0x122   :  { %v389_v28 = vpop.f32.mrb[3].mxu0  ;;  %v413_v29 = vpop.f32.mrb[3].mxu1 }
 0x123   :  { %v285_v30 = vadd.f32 %v627_v23, %v262_v24  ;;  %v293_v31 = vadd.f32 %v627_v23, %v270_v25  ;;  %v390_v32 = vadd.f32 %v389_v28, %v388_v26  ;;  %v414_v33 = vadd.f32 %v413_v29, %v412_v27 }
 0x125   :  { %v301_v34 = vmax.f32 %v285_v30, 0.0  ;;  %v309_v35 = vmax.f32 %v293_v31, 0.0  ;;  %v263_v36 = vmul.f32 %v390_v32, %v622_v19  ;;  %v271_v37 = vmul.f32 %v414_v33, %v622_v19  ;;  %v391_v38 = vpop.f32.mrb[4].mxu0  ;;  %v415_v39 = vpop.f32.mrb[4].mxu1 }
 0x126   :  { %v392_v40 = vpop.f32.mrb[5].mxu0  ;;  %v416_v41 = vpop.f32.mrb[5].mxu1 }
 0x127   :  { %317 = vst [vmem:[#allocation7] sm:$0xff] %v301_v34  ;;  %325 = vst [vmem:[#allocation7 + $0x40] sm:$0xff] %v309_v35  ;;  %v286_v42 = vadd.f32 %v627_v23, %v263_v36  ;;  %v294_v43 = vadd.f32 %v627_v23, %v271_v37  ;;  %v393_v44 = vadd.f32 %v392_v40, %v391_v38 }
 0x128   :  { %v417_v45 = vadd.f32 %v416_v41, %v415_v39 }
 0x129   :  { %v302_v46 = vmax.f32 %v286_v42, 0.0  ;;  %v310_v47 = vmax.f32 %v294_v43, 0.0  ;;  %v264_v48 = vmul.f32 %v393_v44, %v622_v19  ;;  %v394_v50 = vpop.f32.mrb[6].mxu0  ;;  %v418_v51 = vpop.f32.mrb[6].mxu1 }
 0x12a   :  { %v272_v49 = vmul.f32 %v417_v45, %v622_v19  ;;  %v395_v52 = vpop.f32.mrb[7].mxu0  ;;  %v419_v53 = vpop.f32.mrb[7].mxu1 }
 0x12b   :  { %318 = vst [vmem:[#allocation7 + $0x8] sm:$0xff] %v302_v46  ;;  %326 = vst [vmem:[#allocation7 + $0x48] sm:$0xff] %v310_v47  ;;  %v287_v54 = vadd.f32 %v627_v23, %v264_v48  ;;  %v396_v56 = vadd.f32 %v395_v52, %v394_v50  ;;  %v420_v57 = vadd.f32 %v419_v53, %v418_v51 }
 0x12c   :  { %v295_v55 = vadd.f32 %v627_v23, %v272_v49 }
 0x12d   :  { %v303_v58 = vmax.f32 %v287_v54, 0.0  ;;  %v265_v60 = vmul.f32 %v396_v56, %v622_v19  ;;  %v273_v61 = vmul.f32 %v420_v57, %v622_v19  ;;  %v397_v62 = vpop.f32.mrb[8].mxu0  ;;  %v421_v63 = vpop.f32.mrb[8].mxu1 }
 0x12e   :  { %v311_v59 = vmax.f32 %v295_v55, 0.0  ;;  %v398_v0 = vpop.f32.mrb[9].mxu0  ;;  %v422_v1 = vpop.f32.mrb[9].mxu1 }
 0x12f   :  { %319 = vst [vmem:[#allocation7 + $0x10] sm:$0xff] %v303_v58  ;;  %v288_v2 = vadd.f32 %v627_v23, %v265_v60  ;;  %v296_v3 = vadd.f32 %v627_v23, %v273_v61  ;;  %v399_v4 = vadd.f32 %v398_v0, %v397_v62  ;;  %v423_v5 = vadd.f32 %v422_v1, %v421_v63 }
 0x130   :  { %327 = vst [vmem:[#allocation7 + $0x50] sm:$0xff] %v311_v59 }
 0x131   :  { %v304_v6 = vmax.f32 %v288_v2, 0.0  ;;  %v312_v7 = vmax.f32 %v296_v3, 0.0  ;;  %v266_v8 = vmul.f32 %v399_v4, %v622_v19  ;;  %v274_v9 = vmul.f32 %v423_v5, %v622_v19  ;;  %v400_v10 = vpop.f32.mrb[10].mxu0  ;;  %v424_v11 = vpop.f32.mrb[10].mxu1 }
 0x132   :  { %v401_v12 = vpop.f32.mrb[11].mxu0  ;;  %v425_v13 = vpop.f32.mrb[11].mxu1 }
 0x133   :  { %320 = vst [vmem:[#allocation7 + $0x18] sm:$0xff] %v304_v6  ;;  %328 = vst [vmem:[#allocation7 + $0x58] sm:$0xff] %v312_v7  ;;  %v289_v14 = vadd.f32 %v627_v23, %v266_v8  ;;  %v297_v15 = vadd.f32 %v627_v23, %v274_v9  ;;  %v402_v16 = vadd.f32 %v401_v12, %v400_v10 }
 0x134   :  { %v426_v17 = vadd.f32 %v425_v13, %v424_v11 }
 0x135   :  { %v305_v18 = vmax.f32 %v289_v14, 0.0  ;;  %v313_v20 = vmax.f32 %v297_v15, 0.0  ;;  %v267_v21 = vmul.f32 %v402_v16, %v622_v19  ;;  %v403_v24 = vpop.f32.mrb[12].mxu0  ;;  %v427_v25 = vpop.f32.mrb[12].mxu1 }
 0x136   :  { %v275_v22 = vmul.f32 %v426_v17, %v622_v19  ;;  %v404_v26 = vpop.f32.mrb[13].mxu0  ;;  %v428_v27 = vpop.f32.mrb[13].mxu1 }
 0x137   :  { %321 = vst [vmem:[#allocation7 + $0x20] sm:$0xff] %v305_v18  ;;  %329 = vst [vmem:[#allocation7 + $0x60] sm:$0xff] %v313_v20  ;;  %v290_v28 = vadd.f32 %v627_v23, %v267_v21  ;;  %v405_v30 = vadd.f32 %v404_v26, %v403_v24  ;;  %v429_v31 = vadd.f32 %v428_v27, %v427_v25 }
 0x138   :  { %v298_v29 = vadd.f32 %v627_v23, %v275_v22 }
 0x139   :  { %v306_v32 = vmax.f32 %v290_v28, 0.0  ;;  %v268_v34 = vmul.f32 %v405_v30, %v622_v19  ;;  %v276_v35 = vmul.f32 %v429_v31, %v622_v19  ;;  %v406_v36 = vpop.f32.mrb[14].mxu0  ;;  %v430_v37 = vpop.f32.mrb[14].mxu1 }
 0x13a   :  { %v314_v33 = vmax.f32 %v298_v29, 0.0  ;;  %v407_v38 = vpop.f32.mrb[15].mxu0  ;;  %v431_v39 = vpop.f32.mrb[15].mxu1 }
 0x13b   :  { %322 = vst [vmem:[#allocation7 + $0x28] sm:$0xff] %v306_v32  ;;  %v291_v40 = vadd.f32 %v627_v23, %v268_v34  ;;  %v299_v41 = vadd.f32 %v627_v23, %v276_v35  ;;  %v408_v42 = vadd.f32 %v407_v38, %v406_v36  ;;  %v432_v43 = vadd.f32 %v431_v39, %v430_v37 }
 0x13c   :  { %330 = vst [vmem:[#allocation7 + $0x68] sm:$0xff] %v314_v33 }
 0x13d   :  { %v307_v44 = vmax.f32 %v291_v40, 0.0  ;;  %v315_v45 = vmax.f32 %v299_v41, 0.0  ;;  %v269_v46 = vmul.f32 %v408_v42, %v622_v19  ;;  %v277_v47 = vmul.f32 %v432_v43, %v622_v19 }
 0x13f   :  { %323 = vst [vmem:[#allocation7 + $0x30] sm:$0xff] %v307_v44  ;;  %331 = vst [vmem:[#allocation7 + $0x70] sm:$0xff] %v315_v45  ;;  %v292_v48 = vadd.f32 %v627_v23, %v269_v46  ;;  %v300_v49 = vadd.f32 %v627_v23, %v277_v47 }
 0x141   :  { %v308_v50 = vmax.f32 %v292_v48, 0.0  ;;  %v316_v51 = vmax.f32 %v300_v49, 0.0 }
 0x143   :  { %324 = vst [vmem:[#allocation7 + $0x38] sm:$0xff] %v308_v50  ;;  %332 = vst [vmem:[#allocation7 + $0x78] sm:$0xff] %v316_v51 }
 0x144   :  { %543 = shalt.err (!%p540_p6)
}
 0x145   :  { %s544_s22 = scalar_lea.hbm %s680_s4, 2048 }
 0x146   :  { %p545_p7 = scmp.ne.s32.totalorder %s680_s4, %s544_s22  ;;  %p548_p8 = scmp.lt.u32.totalorder %s544_s22, %s680_s4 }
 0x148   :  { %p550_p9 = pnand %p548_p8, %p545_p7 }
 0x14a   :  { %553 = shalt.err (!%p550_p9)
}
 0x14b   :  { %344 = dma.vmem_to_hbm [thread:$0]  %s339_s3, 2048, %s680_s4, [#allocation4], %s564_s0, %s564_s0, %s565_s13  }
 0x14c   :  { %558 = dma.done.wait [#allocation4], 2048  }
 0x14d   :  { %559 = vsyncadd [#allocation4], 4294965248 }
 0x14e   :  { %348 = vsyncpa [#allocation3], 1 }
 0x14f   :  { %349 = vsyncpa [#allocation6], 1 }
 0x150   :  { %350 = vsyncpa [#allocation4], 1 }

</bundles_post_ra>
